<compile_context>
chip_gen: v7x
topology: tpu7x:2x2x1
jax: 0.10.0
libtpu: 0.0.40
codegen_flags: <defaults>
</compile_context>

<pallas_src>
import functools

import jax
import jax.numpy as jnp
from jax.experimental import pallas as pl
from jax.experimental.pallas import tpu as pltpu


def _round_up(x, m):
    return ((x + m - 1) // m) * m


def lstm_reg_kernel(x2d_ref, w1i_ref, b_ref, wbig_ref, wr_ref, br_ref,
                    o_ref, xg_scr, h2_scr, *, seq_len, batch_pad, hidden):
    S, Bp, H = seq_len, batch_pad, hidden
    G = 8 * H          # fused gate lanes per step: [i1,i2,f1,f2,g1,g2,o1,o2]

    # ---- hoisted loop invariants --------------------------------------------
    wbig = wbig_ref[...]                                   # (2H, 8H) bf16

    # Single-tanh activation.  The 0.5 pre-scale of sigmoid(x)=0.5*tanh(x/2)+0.5
    # is folded into the packed weights/biases on the host, so here:
    #   act = tanh(gates) * post_scale + post_shift
    # with (scale, shift) = (1, 0) on the g lanes (cols 4H:6H) and (0.5, 0.5)
    # on the i/f/o lanes.
    lane = jax.lax.broadcasted_iota(jnp.int32, (Bp, G), 1)
    is_g = (lane >= 4 * H) & (lane < 6 * H)
    post_scale = jnp.where(is_g, 1.0, 0.5).astype(jnp.float32)
    post_shift = jnp.where(is_g, 0.0, 0.5).astype(jnp.float32)

    # Input projection (+ both biases) for ALL time steps in one matmul, stored
    # to VMEM scratch so only one (Bp, 8H) slice is live inside the recurrence.
    xg_scr[...] = (jnp.dot(x2d_ref[...], w1i_ref[...],
                           preferred_element_type=jnp.float32) + b_ref[...])

    def activate(gates, c_pk):
        t = jnp.tanh(gates)                                # one EUP pass
        act = t * post_scale + post_shift                  # (Bp, 8H)
        i_pk = act[:, 0:2 * H]                             # [i1 | i2]
        f_pk = act[:, 2 * H:4 * H]                         # [f1 | f2]
        g_pk = act[:, 4 * H:6 * H]                         # [g1 | g2]
        o_pk = act[:, 6 * H:8 * H]                         # [o1 | o2]
        c_new = f_pk * c_pk + i_pk * g_pk                  # packed [c1 | c2]
        h_new = o_pk * jnp.tanh(c_new)                     # packed [h1 | h2]
        return h_new, c_new

    # ---- prologue: layer-1 at t=0 (h1(-1)=h2(-1)=0, so gates come from xg[0])
    lane2h = jax.lax.broadcasted_iota(jnp.int32, (Bp, 2 * H), 1)
    layer1_only = (lane2h < H).astype(jnp.float32)
    h_pk, c_pk = activate(xg_scr[0:Bp, :],
                          jnp.zeros((Bp, 2 * H), jnp.float32))
    h_pk = h_pk * layer1_only                              # [h1(0) | 0]
    c_pk = c_pk * layer1_only                              # [c1(0) | 0]

    # ---- wavefront recurrence: one matmul + one fused activation per step ---
    # Step t consumes [h1(t) | h2(t-1)] and produces [h1(t+1) | h2(t)].
    # Small static S -> fully unrolled (switch to lax.fori_loop for large S).
    for t in range(S):
        idx = min(t + 1, S - 1)      # layer-1 cols of the last block discarded
        gates = xg_scr[idx * Bp:(idx + 1) * Bp, :] + jnp.dot(
            h_pk.astype(jnp.bfloat16), wbig,
            preferred_element_type=jnp.float32)
        h_pk, c_pk = activate(gates, c_pk)
        h2_scr[t * Bp:(t + 1) * Bp, :] = h_pk[:, H:2 * H]  # store h2(t)

    # ---- batched regression head: one matmul, lane-dense 128-col store ------
    y = (jnp.dot(h2_scr[...].astype(jnp.bfloat16), wr_ref[...],
                 preferred_element_type=jnp.float32) + br_ref[...])
    o_ref[...] = y.astype(o_ref.dtype)


def pack_params(p):
    """Host-side one-time repacking of PyTorch-layout weights for the kernel."""
    H = p["w1_hh_T"].shape[0]
    D = p["w1_ih_T"].shape[0]
    O = p["wr_T"].shape[1]
    OL = _round_up(max(O, 128), 128)

    def interleave(l1, l2):
        # (rows, 4H) x 2 with gate blocks [i,f,g,o] -> (rows, 8H) with columns
        # interleaved per gate: [i1, i2, f1, f2, g1, g2, o1, o2].
        blocks = []
        for g in range(4):
            blocks.append(l1[:, g * H:(g + 1) * H])
            blocks.append(l2[:, g * H:(g + 1) * H])
        return jnp.concatenate(blocks, axis=1)

    zH = jnp.zeros((H, 4 * H), jnp.float32)
    zD = jnp.zeros((D, 4 * H), jnp.float32)

    # Wavefront block weight: [h1 | h2] @ W_big -> h-parts of
    # [gates1(t+1) | gates2(t)],  W_big = [[w1_hh, w2_ih], [0, w2_hh]].
    w_big = jnp.concatenate([interleave(p["w1_hh_T"], p["w2_ih_T"]),
                             interleave(zH, p["w2_hh_T"])], axis=0)   # (2H, 8H)
    # Layer-1 input projection lifted into the same interleaved 8H layout
    # (layer-2 columns are zero, so every time block carries exactly b2 there).
    w1i_big = interleave(p["w1_ih_T"], zD)                            # (D, 8H)
    b_big = interleave(p["b1"], p["b2"])                              # (1, 8H)

    # Fold the 0.5 pre-scale of sigmoid(x)=0.5*tanh(x/2)+0.5 into the weights
    # and biases (the g lanes, cols 4H:6H, stay unscaled).
    col = jnp.arange(8 * H)
    pre = jnp.where((col >= 4 * H) & (col < 6 * H), 1.0, 0.5)[None, :]
    w_big = w_big * pre
    w1i_big = w1i_big * pre
    b_big = b_big * pre

    # O=1 head padded out to a lane-dense 128-column slab (zero columns).
    wr = jnp.zeros((H, OL), jnp.float32).at[:, :O].set(p["wr_T"])
    br = jnp.zeros((1, OL), jnp.float32).at[:, :O].set(p["br"])

    return {
        "w1i_big": w1i_big.astype(jnp.bfloat16),   # (D, 8H)
        "b_big": b_big.astype(jnp.float32),        # (1, 8H)
        "w_big": w_big.astype(jnp.bfloat16),       # (2H, 8H)
        "wr": wr.astype(jnp.bfloat16),             # (H, 128)
        "br": br.astype(jnp.float32),              # (1, 128)
    }


@functools.partial(jax.jit, static_argnames=("out_dim",))
def lstm_reg_forward(x, packed, out_dim):
    S, B, D = x.shape
    H = packed["w_big"].shape[0] // 2
    OL = packed["wr"].shape[1]

    Bp = _round_up(max(B, 8), 8)        # full sublane groups

    # Pad batch to Bp, flatten time into the sublane axis, cast matmul input
    # to bf16 (accumulation stays f32 inside the kernel).
    x_p = jnp.zeros((S, Bp, D), jnp.float32).at[:, :B, :].set(
        x.astype(jnp.float32))
    x2d = x_p.reshape(S * Bp, D).astype(jnp.bfloat16)

    kernel = functools.partial(lstm_reg_kernel,
                               seq_len=S, batch_pad=Bp, hidden=H)

    out2d = pl.pallas_call(
        kernel,
        out_shape=jax.ShapeDtypeStruct((S * Bp, OL), jnp.float32),
        in_specs=[pl.BlockSpec(memory_space=pltpu.MemorySpace.VMEM)
                  for _ in range(6)],
        out_specs=pl.BlockSpec(memory_space=pltpu.MemorySpace.VMEM),
        scratch_shapes=[pltpu.VMEM((S * Bp, 8 * H), jnp.float32),   # xg slab
                        pltpu.VMEM((S * Bp, H), jnp.float32)],      # h2 history
    )(x2d, packed["w1i_big"], packed["b_big"], packed["w_big"],
      packed["wr"], packed["br"])

    # Un-pad: back to (S, B, O).
    return out2d.reshape(S, Bp, OL)[:, :B, :out_dim]


def lstm_reg_reference(x, p):
    """Pure-JAX f32 reference mirroring torch.nn.LSTM(2 layers) + nn.Linear."""
    S, B, _ = x.shape
    H = p["w1_hh_T"].shape[0]

    def cell(x_in, h, c, wi, wh, b):
        gates = x_in @ wi + h @ wh + b
        i = jax.nn.sigmoid(gates[:, 0:H])
        f = jax.nn.sigmoid(gates[:, H:2 * H])
        g = jnp.tanh(gates[:, 2 * H:3 * H])
        o = jax.nn.sigmoid(gates[:, 3 * H:4 * H])
        c_new = f * c + i * g
        return o * jnp.tanh(c_new), c_new

    def step(carry, x_t):
        h1, c1, h2, c2 = carry
        h1, c1 = cell(x_t, h1, c1, p["w1_ih_T"], p["w1_hh_T"], p["b1"])
        h2, c2 = cell(h1, h2, c2, p["w2_ih_T"], p["w2_hh_T"], p["b2"])
        y = h2 @ p["wr_T"] + p["br"]
        return (h1, c1, h2, c2), y

    init = tuple(jnp.zeros((B, H), jnp.float32) for _ in range(4))
    _, ys = jax.lax.scan(step, init, x)
    return ys


def init_params(key, input_size, hidden_size, output_size):
    """Deterministic init matching PyTorch shapes (weights stored transposed)."""
    ks = jax.random.split(key, 12)
    H = hidden_size
    lim = 1.0 / jnp.sqrt(jnp.float32(H))

    def u(k, shape, bound):
        return jax.random.uniform(k, shape, jnp.float32, -bound, bound)

    # PyTorch: W_ih (4H, in), W_hh (4H, H), b_ih (4H,), b_hh (4H,) per layer.
    # Weights pre-transposed; b_ih + b_hh folded into one (1, 4H) bias.
    params = {
        "w1_ih_T": u(ks[0], (input_size, 4 * H), lim),
        "w1_hh_T": u(ks[1], (H, 4 * H), lim),
        "b1":      u(ks[2], (1, 4 * H), lim) + u(ks[3], (1, 4 * H), lim),
        "w2_ih_T": u(ks[4], (H, 4 * H), lim),
        "w2_hh_T": u(ks[5], (H, 4 * H), lim),
        "b2":      u(ks[6], (1, 4 * H), lim) + u(ks[7], (1, 4 * H), lim),
        "wr_T":    u(ks[8], (H, output_size), lim),
        "br":      u(ks[9], (1, output_size), lim),
    }
    return params


if __name__ == "__main__":
    SEQ, BATCH = 8, 2
    INPUT_SIZE, HIDDEN_SIZE, OUTPUT_SIZE = 16, 32, 1

    key = jax.random.PRNGKey(0)
    k_x, k_p = jax.random.split(key)
    x = jax.random.normal(k_x, (SEQ, BATCH, INPUT_SIZE), jnp.float32)
    params = init_params(k_p, INPUT_SIZE, HIDDEN_SIZE, OUTPUT_SIZE)
    packed = pack_params(params)

    out = lstm_reg_forward(x, packed, OUTPUT_SIZE)
    out = jax.block_until_ready(out)

    ref = jax.block_until_ready(lstm_reg_reference(x, params))
    assert out.shape == (SEQ, BATCH, OUTPUT_SIZE)
    # bf16 matmul operands (f32 accumulation / f32 carried state) vs. the pure
    # f32 reference: tolerance loosened per review; genuine gate-order /
    # weight-packing bugs would show O(0.1-1) errors and still be caught.
    assert jnp.allclose(out, ref, atol=2e-2, rtol=2e-2), "mismatch vs JAX reference"

    print("KERNEL_OK")
</pallas_src>

<mosaic_0001>
module attributes {stable_mosaic.version = 11 : i64} {
  func.func @lstm_reg_kernel(%arg0: memref<64x16xbf16, #tpu.memory_space<vmem>>, %arg1: memref<16x256xbf16, #tpu.memory_space<vmem>>, %arg2: memref<1x256xf32, #tpu.memory_space<vmem>>, %arg3: memref<64x256xbf16, #tpu.memory_space<vmem>>, %arg4: memref<32x128xbf16, #tpu.memory_space<vmem>>, %arg5: memref<1x128xf32, #tpu.memory_space<vmem>>, %arg6: memref<64x128xf32, #tpu.memory_space<vmem>>, %arg7: memref<64x256xf32, #tpu.memory_space<vmem>>, %arg8: memref<64x32xf32, #tpu.memory_space<vmem>>) attributes {dimension_semantics = [], scalar_prefetch = 0 : i64, scratch_operands = 2 : i64, tpu.core_type = #tpu.core_type<tc>} {
    %c0 = arith.constant 0 : index
    %c0_0 = arith.constant 0 : index
    %0 = vector.load %arg3[%c0, %c0_0] : memref<64x256xbf16, #tpu.memory_space<vmem>>, vector<64x256xbf16>
    %1 = tpu.iota {dimensions = array<i32: 1>} : vector<8x256xi32>
    %c128_i32 = arith.constant 128 : i32
    %2 = vector.broadcast %c128_i32 : i32 to vector<8x256xi32>
    %3 = arith.cmpi sge, %1, %2 : vector<8x256xi32>
    %c192_i32 = arith.constant 192 : i32
    %4 = vector.broadcast %c192_i32 : i32 to vector<8x256xi32>
    %5 = arith.cmpi slt, %1, %4 : vector<8x256xi32>
    %6 = arith.andi %3, %5 : vector<8x256xi1>
    %cst = arith.constant 1.000000e+00 : f32
    %cst_1 = arith.constant 5.000000e-01 : f32
    %7 = vector.broadcast %cst : f32 to vector<8x256xf32>
    %8 = vector.broadcast %cst_1 : f32 to vector<8x256xf32>
    %9 = arith.select %6, %7, %8 : vector<8x256xi1>, vector<8x256xf32>
    %cst_2 = arith.constant 0.000000e+00 : f32
    %cst_3 = arith.constant 5.000000e-01 : f32
    %10 = vector.broadcast %cst_2 : f32 to vector<8x256xf32>
    %11 = vector.broadcast %cst_3 : f32 to vector<8x256xf32>
    %12 = arith.select %6, %10, %11 : vector<8x256xi1>, vector<8x256xf32>
    %c0_4 = arith.constant 0 : index
    %c0_5 = arith.constant 0 : index
    %13 = vector.load %arg0[%c0_4, %c0_5] : memref<64x16xbf16, #tpu.memory_space<vmem>>, vector<64x16xbf16>
    %c0_6 = arith.constant 0 : index
    %c0_7 = arith.constant 0 : index
    %14 = vector.load %arg1[%c0_6, %c0_7] : memref<16x256xbf16, #tpu.memory_space<vmem>>, vector<16x256xbf16>
    %cst_8 = arith.constant dense<0.000000e+00> : vector<64x256xf32>
    %15 = tpu.matmul %13, %14, %cst_8 {dimension_numbers = #tpu.dot_dimension_numbers<[1], [0], [0], [1], [0, 0, 1, 1], [], []>} : vector<64x16xbf16>, vector<16x256xbf16>, vector<64x256xf32> -> vector<64x256xf32>
    %c0_9 = arith.constant 0 : index
    %c0_10 = arith.constant 0 : index
    %16 = vector.load %arg2[%c0_9, %c0_10] : memref<1x256xf32, #tpu.memory_space<vmem>>, vector<1x256xf32>
    %17 = vector.broadcast %16 : vector<1x256xf32> to vector<64x256xf32>
    %18 = arith.addf %15, %17 : vector<64x256xf32>
    %c0_11 = arith.constant 0 : index
    %c0_12 = arith.constant 0 : index
    %19 = vector.load %arg7[%c0_11, %c0_12] : memref<64x256xf32, #tpu.memory_space<vmem>>, vector<64x256xf32>
    tpu.vector_store %arg7[%c0_11, %c0_12], %18 {strides = array<i32>} : memref<64x256xf32, #tpu.memory_space<vmem>>, vector<64x256xf32>,
    %20 = tpu.iota {dimensions = array<i32: 1>} : vector<8x64xi32>
    %c32_i32 = arith.constant 32 : i32
    %21 = vector.broadcast %c32_i32 : i32 to vector<8x64xi32>
    %22 = arith.cmpi slt, %20, %21 : vector<8x64xi32>
    %23 = arith.extui %22 : vector<8x64xi1> to vector<8x64xi32>
    %24 = arith.sitofp %23 : vector<8x64xi32> to vector<8x64xf32>
    %c0_13 = arith.constant 0 : index
    %c0_14 = arith.constant 0 : index
    %25 = vector.load %arg7[%c0_13, %c0_14] : memref<64x256xf32, #tpu.memory_space<vmem>>, vector<8x256xf32>
    %cst_15 = arith.constant 0.000000e+00 : f32
    %26 = vector.broadcast %cst_15 : f32 to vector<8x64xf32>
    %27 = math.tanh %25 : vector<8x256xf32>
    %28 = arith.mulf %27, %9 : vector<8x256xf32>
    %29 = arith.addf %28, %12 : vector<8x256xf32>
    %30 = vector.extract_strided_slice %29 {offsets = [0, 0], sizes = [8, 64], strides = [1, 1]} : vector<8x256xf32> to vector<8x64xf32>
    %31 = vector.extract_strided_slice %29 {offsets = [0, 64], sizes = [8, 64], strides = [1, 1]} : vector<8x256xf32> to vector<8x64xf32>
    %32 = vector.extract_strided_slice %29 {offsets = [0, 128], sizes = [8, 64], strides = [1, 1]} : vector<8x256xf32> to vector<8x64xf32>
    %33 = vector.extract_strided_slice %29 {offsets = [0, 192], sizes = [8, 64], strides = [1, 1]} : vector<8x256xf32> to vector<8x64xf32>
    %34 = arith.mulf %31, %26 : vector<8x64xf32>
    %35 = arith.mulf %30, %32 : vector<8x64xf32>
    %36 = arith.addf %34, %35 : vector<8x64xf32>
    %37 = math.tanh %36 : vector<8x64xf32>
    %38 = arith.mulf %33, %37 : vector<8x64xf32>
    %39 = arith.mulf %38, %24 : vector<8x64xf32>
    %40 = arith.mulf %36, %24 : vector<8x64xf32>
    %c8 = arith.constant 8 : index
    %c0_16 = arith.constant 0 : index
    %41 = vector.load %arg7[%c8, %c0_16] : memref<64x256xf32, #tpu.memory_space<vmem>>, vector<8x256xf32>
    %42 = arith.truncf %39 : vector<8x64xf32> to vector<8x64xbf16>
    %cst_17 = arith.constant dense<0.000000e+00> : vector<8x256xf32>
    %43 = tpu.matmul %42, %0, %cst_17 {dimension_numbers = #tpu.dot_dimension_numbers<[1], [0], [0], [1], [0, 0, 1, 1], [], []>} : vector<8x64xbf16>, vector<64x256xbf16>, vector<8x256xf32> -> vector<8x256xf32>
    %44 = arith.addf %41, %43 : vector<8x256xf32>
    %45 = math.tanh %44 : vector<8x256xf32>
    %46 = arith.mulf %45, %9 : vector<8x256xf32>
    %47 = arith.addf %46, %12 : vector<8x256xf32>
    %48 = vector.extract_strided_slice %47 {offsets = [0, 0], sizes = [8, 64], strides = [1, 1]} : vector<8x256xf32> to vector<8x64xf32>
    %49 = vector.extract_strided_slice %47 {offsets = [0, 64], sizes = [8, 64], strides = [1, 1]} : vector<8x256xf32> to vector<8x64xf32>
    %50 = vector.extract_strided_slice %47 {offsets = [0, 128], sizes = [8, 64], strides = [1, 1]} : vector<8x256xf32> to vector<8x64xf32>
    %51 = vector.extract_strided_slice %47 {offsets = [0, 192], sizes = [8, 64], strides = [1, 1]} : vector<8x256xf32> to vector<8x64xf32>
    %52 = arith.mulf %49, %40 : vector<8x64xf32>
    %53 = arith.mulf %48, %50 : vector<8x64xf32>
    %54 = arith.addf %52, %53 : vector<8x64xf32>
    %55 = math.tanh %54 : vector<8x64xf32>
    %56 = arith.mulf %51, %55 : vector<8x64xf32>
    %57 = vector.extract_strided_slice %56 {offsets = [0, 32], sizes = [8, 32], strides = [1, 1]} : vector<8x64xf32> to vector<8x32xf32>
    %c0_18 = arith.constant 0 : index
    %c0_19 = arith.constant 0 : index
    %58 = vector.load %arg8[%c0_18, %c0_19] : memref<64x32xf32, #tpu.memory_space<vmem>>, vector<8x32xf32>
    tpu.vector_store %arg8[%c0_18, %c0_19], %57 {strides = array<i32>} : memref<64x32xf32, #tpu.memory_space<vmem>>, vector<8x32xf32>,
    %c16 = arith.constant 16 : index
    %c0_20 = arith.constant 0 : index
    %59 = vector.load %arg7[%c16, %c0_20] : memref<64x256xf32, #tpu.memory_space<vmem>>, vector<8x256xf32>
    %60 = arith.truncf %56 : vector<8x64xf32> to vector<8x64xbf16>
    %cst_21 = arith.constant dense<0.000000e+00> : vector<8x256xf32>
    %61 = tpu.matmul %60, %0, %cst_21 {dimension_numbers = #tpu.dot_dimension_numbers<[1], [0], [0], [1], [0, 0, 1, 1], [], []>} : vector<8x64xbf16>, vector<64x256xbf16>, vector<8x256xf32> -> vector<8x256xf32>
    %62 = arith.addf %59, %61 : vector<8x256xf32>
    %63 = math.tanh %62 : vector<8x256xf32>
    %64 = arith.mulf %63, %9 : vector<8x256xf32>
    %65 = arith.addf %64, %12 : vector<8x256xf32>
    %66 = vector.extract_strided_slice %65 {offsets = [0, 0], sizes = [8, 64], strides = [1, 1]} : vector<8x256xf32> to vector<8x64xf32>
    %67 = vector.extract_strided_slice %65 {offsets = [0, 64], sizes = [8, 64], strides = [1, 1]} : vector<8x256xf32> to vector<8x64xf32>
    %68 = vector.extract_strided_slice %65 {offsets = [0, 128], sizes = [8, 64], strides = [1, 1]} : vector<8x256xf32> to vector<8x64xf32>
    %69 = vector.extract_strided_slice %65 {offsets = [0, 192], sizes = [8, 64], strides = [1, 1]} : vector<8x256xf32> to vector<8x64xf32>
    %70 = arith.mulf %67, %54 : vector<8x64xf32>
    %71 = arith.mulf %66, %68 : vector<8x64xf32>
    %72 = arith.addf %70, %71 : vector<8x64xf32>
    %73 = math.tanh %72 : vector<8x64xf32>
    %74 = arith.mulf %69, %73 : vector<8x64xf32>
    %75 = vector.extract_strided_slice %74 {offsets = [0, 32], sizes = [8, 32], strides = [1, 1]} : vector<8x64xf32> to vector<8x32xf32>
    %c8_22 = arith.constant 8 : index
    %c0_23 = arith.constant 0 : index
    %76 = vector.load %arg8[%c8_22, %c0_23] : memref<64x32xf32, #tpu.memory_space<vmem>>, vector<8x32xf32>
    tpu.vector_store %arg8[%c8_22, %c0_23], %75 {strides = array<i32>} : memref<64x32xf32, #tpu.memory_space<vmem>>, vector<8x32xf32>,
    %c24 = arith.constant 24 : index
    %c0_24 = arith.constant 0 : index
    %77 = vector.load %arg7[%c24, %c0_24] : memref<64x256xf32, #tpu.memory_space<vmem>>, vector<8x256xf32>
    %78 = arith.truncf %74 : vector<8x64xf32> to vector<8x64xbf16>
    %cst_25 = arith.constant dense<0.000000e+00> : vector<8x256xf32>
    %79 = tpu.matmul %78, %0, %cst_25 {dimension_numbers = #tpu.dot_dimension_numbers<[1], [0], [0], [1], [0, 0, 1, 1], [], []>} : vector<8x64xbf16>, vector<64x256xbf16>, vector<8x256xf32> -> vector<8x256xf32>
    %80 = arith.addf %77, %79 : vector<8x256xf32>
    %81 = math.tanh %80 : vector<8x256xf32>
    %82 = arith.mulf %81, %9 : vector<8x256xf32>
    %83 = arith.addf %82, %12 : vector<8x256xf32>
    %84 = vector.extract_strided_slice %83 {offsets = [0, 0], sizes = [8, 64], strides = [1, 1]} : vector<8x256xf32> to vector<8x64xf32>
    %85 = vector.extract_strided_slice %83 {offsets = [0, 64], sizes = [8, 64], strides = [1, 1]} : vector<8x256xf32> to vector<8x64xf32>
    %86 = vector.extract_strided_slice %83 {offsets = [0, 128], sizes = [8, 64], strides = [1, 1]} : vector<8x256xf32> to vector<8x64xf32>
    %87 = vector.extract_strided_slice %83 {offsets = [0, 192], sizes = [8, 64], strides = [1, 1]} : vector<8x256xf32> to vector<8x64xf32>
    %88 = arith.mulf %85, %72 : vector<8x64xf32>
    %89 = arith.mulf %84, %86 : vector<8x64xf32>
    %90 = arith.addf %88, %89 : vector<8x64xf32>
    %91 = math.tanh %90 : vector<8x64xf32>
    %92 = arith.mulf %87, %91 : vector<8x64xf32>
    %93 = vector.extract_strided_slice %92 {offsets = [0, 32], sizes = [8, 32], strides = [1, 1]} : vector<8x64xf32> to vector<8x32xf32>
    %c16_26 = arith.constant 16 : index
    %c0_27 = arith.constant 0 : index
    %94 = vector.load %arg8[%c16_26, %c0_27] : memref<64x32xf32, #tpu.memory_space<vmem>>, vector<8x32xf32>
    tpu.vector_store %arg8[%c16_26, %c0_27], %93 {strides = array<i32>} : memref<64x32xf32, #tpu.memory_space<vmem>>, vector<8x32xf32>,
    %c32 = arith.constant 32 : index
    %c0_28 = arith.constant 0 : index
    %95 = vector.load %arg7[%c32, %c0_28] : memref<64x256xf32, #tpu.memory_space<vmem>>, vector<8x256xf32>
    %96 = arith.truncf %92 : vector<8x64xf32> to vector<8x64xbf16>
    %cst_29 = arith.constant dense<0.000000e+00> : vector<8x256xf32>
    %97 = tpu.matmul %96, %0, %cst_29 {dimension_numbers = #tpu.dot_dimension_numbers<[1], [0], [0], [1], [0, 0, 1, 1], [], []>} : vector<8x64xbf16>, vector<64x256xbf16>, vector<8x256xf32> -> vector<8x256xf32>
    %98 = arith.addf %95, %97 : vector<8x256xf32>
    %99 = math.tanh %98 : vector<8x256xf32>
    %100 = arith.mulf %99, %9 : vector<8x256xf32>
    %101 = arith.addf %100, %12 : vector<8x256xf32>
    %102 = vector.extract_strided_slice %101 {offsets = [0, 0], sizes = [8, 64], strides = [1, 1]} : vector<8x256xf32> to vector<8x64xf32>
    %103 = vector.extract_strided_slice %101 {offsets = [0, 64], sizes = [8, 64], strides = [1, 1]} : vector<8x256xf32> to vector<8x64xf32>
    %104 = vector.extract_strided_slice %101 {offsets = [0, 128], sizes = [8, 64], strides = [1, 1]} : vector<8x256xf32> to vector<8x64xf32>
    %105 = vector.extract_strided_slice %101 {offsets = [0, 192], sizes = [8, 64], strides = [1, 1]} : vector<8x256xf32> to vector<8x64xf32>
    %106 = arith.mulf %103, %90 : vector<8x64xf32>
    %107 = arith.mulf %102, %104 : vector<8x64xf32>
    %108 = arith.addf %106, %107 : vector<8x64xf32>
    %109 = math.tanh %108 : vector<8x64xf32>
    %110 = arith.mulf %105, %109 : vector<8x64xf32>
    %111 = vector.extract_strided_slice %110 {offsets = [0, 32], sizes = [8, 32], strides = [1, 1]} : vector<8x64xf32> to vector<8x32xf32>
    %c24_30 = arith.constant 24 : index
    %c0_31 = arith.constant 0 : index
    %112 = vector.load %arg8[%c24_30, %c0_31] : memref<64x32xf32, #tpu.memory_space<vmem>>, vector<8x32xf32>
    tpu.vector_store %arg8[%c24_30, %c0_31], %111 {strides = array<i32>} : memref<64x32xf32, #tpu.memory_space<vmem>>, vector<8x32xf32>,
    %c40 = arith.constant 40 : index
    %c0_32 = arith.constant 0 : index
    %113 = vector.load %arg7[%c40, %c0_32] : memref<64x256xf32, #tpu.memory_space<vmem>>, vector<8x256xf32>
    %114 = arith.truncf %110 : vector<8x64xf32> to vector<8x64xbf16>
    %cst_33 = arith.constant dense<0.000000e+00> : vector<8x256xf32>
    %115 = tpu.matmul %114, %0, %cst_33 {dimension_numbers = #tpu.dot_dimension_numbers<[1], [0], [0], [1], [0, 0, 1, 1], [], []>} : vector<8x64xbf16>, vector<64x256xbf16>, vector<8x256xf32> -> vector<8x256xf32>
    %116 = arith.addf %113, %115 : vector<8x256xf32>
    %117 = math.tanh %116 : vector<8x256xf32>
    %118 = arith.mulf %117, %9 : vector<8x256xf32>
    %119 = arith.addf %118, %12 : vector<8x256xf32>
    %120 = vector.extract_strided_slice %119 {offsets = [0, 0], sizes = [8, 64], strides = [1, 1]} : vector<8x256xf32> to vector<8x64xf32>
    %121 = vector.extract_strided_slice %119 {offsets = [0, 64], sizes = [8, 64], strides = [1, 1]} : vector<8x256xf32> to vector<8x64xf32>
    %122 = vector.extract_strided_slice %119 {offsets = [0, 128], sizes = [8, 64], strides = [1, 1]} : vector<8x256xf32> to vector<8x64xf32>
    %123 = vector.extract_strided_slice %119 {offsets = [0, 192], sizes = [8, 64], strides = [1, 1]} : vector<8x256xf32> to vector<8x64xf32>
    %124 = arith.mulf %121, %108 : vector<8x64xf32>
    %125 = arith.mulf %120, %122 : vector<8x64xf32>
    %126 = arith.addf %124, %125 : vector<8x64xf32>
    %127 = math.tanh %126 : vector<8x64xf32>
    %128 = arith.mulf %123, %127 : vector<8x64xf32>
    %129 = vector.extract_strided_slice %128 {offsets = [0, 32], sizes = [8, 32], strides = [1, 1]} : vector<8x64xf32> to vector<8x32xf32>
    %c32_34 = arith.constant 32 : index
    %c0_35 = arith.constant 0 : index
    %130 = vector.load %arg8[%c32_34, %c0_35] : memref<64x32xf32, #tpu.memory_space<vmem>>, vector<8x32xf32>
    tpu.vector_store %arg8[%c32_34, %c0_35], %129 {strides = array<i32>} : memref<64x32xf32, #tpu.memory_space<vmem>>, vector<8x32xf32>,
    %c48 = arith.constant 48 : index
    %c0_36 = arith.constant 0 : index
    %131 = vector.load %arg7[%c48, %c0_36] : memref<64x256xf32, #tpu.memory_space<vmem>>, vector<8x256xf32>
    %132 = arith.truncf %128 : vector<8x64xf32> to vector<8x64xbf16>
    %cst_37 = arith.constant dense<0.000000e+00> : vector<8x256xf32>
    %133 = tpu.matmul %132, %0, %cst_37 {dimension_numbers = #tpu.dot_dimension_numbers<[1], [0], [0], [1], [0, 0, 1, 1], [], []>} : vector<8x64xbf16>, vector<64x256xbf16>, vector<8x256xf32> -> vector<8x256xf32>
    %134 = arith.addf %131, %133 : vector<8x256xf32>
    %135 = math.tanh %134 : vector<8x256xf32>
    %136 = arith.mulf %135, %9 : vector<8x256xf32>
    %137 = arith.addf %136, %12 : vector<8x256xf32>
    %138 = vector.extract_strided_slice %137 {offsets = [0, 0], sizes = [8, 64], strides = [1, 1]} : vector<8x256xf32> to vector<8x64xf32>
    %139 = vector.extract_strided_slice %137 {offsets = [0, 64], sizes = [8, 64], strides = [1, 1]} : vector<8x256xf32> to vector<8x64xf32>
    %140 = vector.extract_strided_slice %137 {offsets = [0, 128], sizes = [8, 64], strides = [1, 1]} : vector<8x256xf32> to vector<8x64xf32>
    %141 = vector.extract_strided_slice %137 {offsets = [0, 192], sizes = [8, 64], strides = [1, 1]} : vector<8x256xf32> to vector<8x64xf32>
    %142 = arith.mulf %139, %126 : vector<8x64xf32>
    %143 = arith.mulf %138, %140 : vector<8x64xf32>
    %144 = arith.addf %142, %143 : vector<8x64xf32>
    %145 = math.tanh %144 : vector<8x64xf32>
    %146 = arith.mulf %141, %145 : vector<8x64xf32>
    %147 = vector.extract_strided_slice %146 {offsets = [0, 32], sizes = [8, 32], strides = [1, 1]} : vector<8x64xf32> to vector<8x32xf32>
    %c40_38 = arith.constant 40 : index
    %c0_39 = arith.constant 0 : index
    %148 = vector.load %arg8[%c40_38, %c0_39] : memref<64x32xf32, #tpu.memory_space<vmem>>, vector<8x32xf32>
    tpu.vector_store %arg8[%c40_38, %c0_39], %147 {strides = array<i32>} : memref<64x32xf32, #tpu.memory_space<vmem>>, vector<8x32xf32>,
    %c56 = arith.constant 56 : index
    %c0_40 = arith.constant 0 : index
    %149 = vector.load %arg7[%c56, %c0_40] : memref<64x256xf32, #tpu.memory_space<vmem>>, vector<8x256xf32>
    %150 = arith.truncf %146 : vector<8x64xf32> to vector<8x64xbf16>
    %cst_41 = arith.constant dense<0.000000e+00> : vector<8x256xf32>
    %151 = tpu.matmul %150, %0, %cst_41 {dimension_numbers = #tpu.dot_dimension_numbers<[1], [0], [0], [1], [0, 0, 1, 1], [], []>} : vector<8x64xbf16>, vector<64x256xbf16>, vector<8x256xf32> -> vector<8x256xf32>
    %152 = arith.addf %149, %151 : vector<8x256xf32>
    %153 = math.tanh %152 : vector<8x256xf32>
    %154 = arith.mulf %153, %9 : vector<8x256xf32>
    %155 = arith.addf %154, %12 : vector<8x256xf32>
    %156 = vector.extract_strided_slice %155 {offsets = [0, 0], sizes = [8, 64], strides = [1, 1]} : vector<8x256xf32> to vector<8x64xf32>
    %157 = vector.extract_strided_slice %155 {offsets = [0, 64], sizes = [8, 64], strides = [1, 1]} : vector<8x256xf32> to vector<8x64xf32>
    %158 = vector.extract_strided_slice %155 {offsets = [0, 128], sizes = [8, 64], strides = [1, 1]} : vector<8x256xf32> to vector<8x64xf32>
    %159 = vector.extract_strided_slice %155 {offsets = [0, 192], sizes = [8, 64], strides = [1, 1]} : vector<8x256xf32> to vector<8x64xf32>
    %160 = arith.mulf %157, %144 : vector<8x64xf32>
    %161 = arith.mulf %156, %158 : vector<8x64xf32>
    %162 = arith.addf %160, %161 : vector<8x64xf32>
    %163 = math.tanh %162 : vector<8x64xf32>
    %164 = arith.mulf %159, %163 : vector<8x64xf32>
    %165 = vector.extract_strided_slice %164 {offsets = [0, 32], sizes = [8, 32], strides = [1, 1]} : vector<8x64xf32> to vector<8x32xf32>
    %c48_42 = arith.constant 48 : index
    %c0_43 = arith.constant 0 : index
    %166 = vector.load %arg8[%c48_42, %c0_43] : memref<64x32xf32, #tpu.memory_space<vmem>>, vector<8x32xf32>
    tpu.vector_store %arg8[%c48_42, %c0_43], %165 {strides = array<i32>} : memref<64x32xf32, #tpu.memory_space<vmem>>, vector<8x32xf32>,
    %c56_44 = arith.constant 56 : index
    %c0_45 = arith.constant 0 : index
    %167 = vector.load %arg7[%c56_44, %c0_45] : memref<64x256xf32, #tpu.memory_space<vmem>>, vector<8x256xf32>
    %168 = arith.truncf %164 : vector<8x64xf32> to vector<8x64xbf16>
    %cst_46 = arith.constant dense<0.000000e+00> : vector<8x256xf32>
    %169 = tpu.matmul %168, %0, %cst_46 {dimension_numbers = #tpu.dot_dimension_numbers<[1], [0], [0], [1], [0, 0, 1, 1], [], []>} : vector<8x64xbf16>, vector<64x256xbf16>, vector<8x256xf32> -> vector<8x256xf32>
    %170 = arith.addf %167, %169 : vector<8x256xf32>
    %171 = math.tanh %170 : vector<8x256xf32>
    %172 = arith.mulf %171, %9 : vector<8x256xf32>
    %173 = arith.addf %172, %12 : vector<8x256xf32>
    %174 = vector.extract_strided_slice %173 {offsets = [0, 0], sizes = [8, 64], strides = [1, 1]} : vector<8x256xf32> to vector<8x64xf32>
    %175 = vector.extract_strided_slice %173 {offsets = [0, 64], sizes = [8, 64], strides = [1, 1]} : vector<8x256xf32> to vector<8x64xf32>
    %176 = vector.extract_strided_slice %173 {offsets = [0, 128], sizes = [8, 64], strides = [1, 1]} : vector<8x256xf32> to vector<8x64xf32>
    %177 = vector.extract_strided_slice %173 {offsets = [0, 192], sizes = [8, 64], strides = [1, 1]} : vector<8x256xf32> to vector<8x64xf32>
    %178 = arith.mulf %175, %162 : vector<8x64xf32>
    %179 = arith.mulf %174, %176 : vector<8x64xf32>
    %180 = arith.addf %178, %179 : vector<8x64xf32>
    %181 = math.tanh %180 : vector<8x64xf32>
    %182 = arith.mulf %177, %181 : vector<8x64xf32>
    %183 = vector.extract_strided_slice %182 {offsets = [0, 32], sizes = [8, 32], strides = [1, 1]} : vector<8x64xf32> to vector<8x32xf32>
    %c56_47 = arith.constant 56 : index
    %c0_48 = arith.constant 0 : index
    %184 = vector.load %arg8[%c56_47, %c0_48] : memref<64x32xf32, #tpu.memory_space<vmem>>, vector<8x32xf32>
    tpu.vector_store %arg8[%c56_47, %c0_48], %183 {strides = array<i32>} : memref<64x32xf32, #tpu.memory_space<vmem>>, vector<8x32xf32>,
    %c0_49 = arith.constant 0 : index
    %c0_50 = arith.constant 0 : index
    %185 = vector.load %arg8[%c0_49, %c0_50] : memref<64x32xf32, #tpu.memory_space<vmem>>, vector<64x32xf32>
    %186 = arith.truncf %185 : vector<64x32xf32> to vector<64x32xbf16>
    %c0_51 = arith.constant 0 : index
    %c0_52 = arith.constant 0 : index
    %187 = vector.load %arg4[%c0_51, %c0_52] : memref<32x128xbf16, #tpu.memory_space<vmem>>, vector<32x128xbf16>
    %cst_53 = arith.constant dense<0.000000e+00> : vector<64x128xf32>
    %188 = tpu.matmul %186, %187, %cst_53 {dimension_numbers = #tpu.dot_dimension_numbers<[1], [0], [0], [1], [0, 0, 1, 1], [], []>} : vector<64x32xbf16>, vector<32x128xbf16>, vector<64x128xf32> -> vector<64x128xf32>
    %c0_54 = arith.constant 0 : index
    %c0_55 = arith.constant 0 : index
    %189 = vector.load %arg5[%c0_54, %c0_55] : memref<1x128xf32, #tpu.memory_space<vmem>>, vector<1x128xf32>
    %190 = vector.broadcast %189 : vector<1x128xf32> to vector<64x128xf32>
    %191 = arith.addf %188, %190 : vector<64x128xf32>
    %c0_56 = arith.constant 0 : index
    %c0_57 = arith.constant 0 : index
    %192 = vector.load %arg6[%c0_56, %c0_57] : memref<64x128xf32, #tpu.memory_space<vmem>>, vector<64x128xf32>
    tpu.vector_store %arg6[%c0_56, %c0_57], %191 {strides = array<i32>} : memref<64x128xf32, #tpu.memory_space<vmem>>, vector<64x128xf32>,
    return
  }
}

</mosaic_0001>

<bundles_post_ra>
// kernel: lstm_reg_forward.1
= control target key start
LH: loop header
LB: loop body
LE: loop exit
PB: predicated region body
PF: predicated region fallthrough
CT: control target
= control target key end

     0   :  { %11 = vsyncpa [#allocation5], 0  ;;  %s1560_s0 = inlined_call_operand.vmem [shape: bf16[64,16], index: 0, kind: input, shape index: {}]   ;;  %s1561_s1 = inlined_call_operand.hbm [shape: bf16[16,256], index: 1, kind: input, shape index: {}]   ;;  %s1562_s2 = inlined_call_operand.vmem [shape: f32[1,256], index: 2, kind: input, shape index: {}]   ;;  %s1563_s3 = inlined_call_operand.vmem [shape: bf16[64,256], index: 3, kind: input, shape index: {}]   ;;  %s1564_s4 = inlined_call_operand.vmem [shape: bf16[32,128], index: 4, kind: input, shape index: {}]   ;;  %s1565_s5 = inlined_call_operand.hbm [shape: f32[1,128], index: 5, kind: input, shape index: {}]   ;;  %s1566_s6 = inlined_call_operand.vmem [shape: f32[64,128], index: 6, kind: output, shape index: {}]  }
   0x1   :  { %12 = vsyncpa [#allocation7], 0  ;;  %s1179_s21 = smov [#allocation4]   ;;  %s1131_s25 = scalar_lea.hbm %s1561_s1, 256 }
   0x2   :  { %s20_s22 = sshll.u32 %s1179_s21, 4  ;;  %p1132_p0 = scmp.ne.s32.totalorder %s1561_s1, %s1131_s25  ;;  %s21_s22 = int_to_ptr.vmem [resolvable:$true] %s20_s22 }
   0x3   :  { %p1135_p1 = scmp.lt.u32.totalorder %s1131_s25, %s1561_s1 }
   0x5   :  { %p1137_p2 = pnand %p1135_p1, %p1132_p0 }
   0x7   :  { %1140 = shalt.err (!%p1137_p2)
}
   0x8   :  { %s1141_s30 = scalar_lea.vmem %s21_s22, 256  ;;  %p1146_p4 = scmp.lt.s32.totalorder %s21_s22, %s21_s22 }
   0x9   :  { %p1142_p3 = scmp.ne.s32.totalorder %s21_s22, %s1141_s30  ;;  %p1147_p5 = scmp.lt.s32.totalorder %s1141_s30, %s1141_s30 }
   0xb   :  { %p1148_p6 = por %p1147_p5, %p1146_p4 }
   0xd   :  { %p1149_p7 = pnand %p1148_p6, %p1142_p3 }
   0xf   :  { %1152 = shalt.err (!%p1149_p7)
}
  0x10   :  { %s1180_s7 = smov 128   ;;  %s1181_s8 = smov 8  }
  0x11   :  { %26 = dma.hbm_to_vmem [thread:$0]  %s1561_s1, 256, %s21_s22, [#allocation5], %s1180_s7, %s1180_s7, %s1181_s8  }
  0x12   :  { %s1182_s11 = smov [#allocation6]   ;;  %s1153_s15 = scalar_lea.hbm %s1565_s5, 16 }
  0x13   :  { %s39_s12 = sshll.u32 %s1182_s11, 4  ;;  %p1154_p8 = scmp.ne.s32.totalorder %s1565_s5, %s1153_s15  ;;  %s40_s12 = int_to_ptr.vmem [resolvable:$true] %s39_s12 }
  0x14   :  { %p1157_p9 = scmp.lt.u32.totalorder %s1153_s15, %s1565_s5 }
  0x16   :  { %p1159_p10 = pnand %p1157_p9, %p1154_p8 }
  0x18   :  { %1162 = shalt.err (!%p1159_p10)
}
  0x19   :  { %s1163_s20 = scalar_lea.vmem %s40_s12, 16  ;;  %s1167_s1 = scalar_lea.vmem %s40_s12, 32 }
  0x1a   :  { %p1164_p11 = scmp.ne.s32.totalorder %s40_s12, %s1163_s20  ;;  %p1168_p12 = scmp.lt.s32.totalorder %s40_s12, %s40_s12 }
  0x1b   :  { %p1169_p13 = scmp.lt.s32.totalorder %s1167_s1, %s1163_s20 }
  0x1d   :  { %p1170_p0 = por %p1169_p13, %p1168_p12 }
  0x1f   :  { %p1171_p1 = pnand %p1170_p0, %p1164_p11 }
  0x21   :  { %1174 = shalt.err (!%p1171_p1)
}
  0x22   :  { %42 = dma.hbm_to_vmem [thread:$0]  %s1565_s5, 16, %s40_s12, [#allocation7]  }
  0x23   :  { %1175 = dma.done.wait [#allocation5], 256  }
  0x24   :  { %1176 = vsyncadd [#allocation5], 4294967040 }
  0x25   :  { %1177 = dma.done.wait [#allocation7], 16  }
  0x26   :  { %1178 = vsyncadd [#allocation7], 4294967280  ;;  %v1183_v0 = vmov 0   ;;  %v1056_v1 = vld [vmem:[#allocation4 + $0x4] ss:$8 sps:$4 sm:$0xff]   ;;  %v1059_v3 = vld [vmem:[%s1560_s0] sm:$0xff]   ;;  %v58_v4 = vlaneseq }
  0x27   :  { %168 = vmatprep.mubr.bf16.mxu0 %v1183_v0  ;;  %333 = vmatprep.mubr.bf16.mxu1 %v1183_v0  ;;  %v1058_v2 = vld [vmem:[#allocation4] ss:$8 sps:$4 sm:$0xff]   ;;  %vm123_vm0 = vcmask 130048   ;;  %v81_v7 = vld [vmem:[%s1562_s2] sm:$0x3]  ;;  %v1184_v19 = vmov 0.5  }
  0x28   :  { %136 = vmatprep.subr.bf16.mxu0 %v1056_v1  ;;  %v84_v5 = vshrl.u32 %v58_v4, 7  ;;  %v59_v14 = vand.u32 127, %v58_v4  ;;  %s1185_s2 = smov 64   ;;  %v1186_v29 = vmov 0.0   ;;  %v1278_v31 = vld [vmem:[%s1563_s3 + $0x4] ss:$8 sps:$4 sm:$0xff]  }
  0x29   :  { %137 = vmatpush1.bf16.msra.mxu0 %v1058_v2  ;;  %v1283_v32 = vld [vmem:[%s1563_s3] ss:$8 sps:$4 sm:$0xff]   ;;  %v1288_v33 = vld [vmem:[%s1563_s3 + $0x14] ss:$8 sps:$4 sm:$0xff]   ;;  %301 = vmatprep.subr.bf16.mxu1 %v1278_v31  ;;  %v1296_v34 = vld [vmem:[%s1563_s3 + $0x10] ss:$8 sps:$4 sm:$0xff]  }
  0x2a   :  { %v85_v6 = vsub.s32 0, %v84_v5  ;;  %v89_v8 = vsub.s32 1, %v84_v5  ;;  %v60_v18 = vadd.s32 128, %v59_v14  ;;  %vm225_vm2 = vcmp.lt.s32.totalorder %v59_v14, 32  ;;  %446 = vmatprep.subr.bf16.mxu0 %v1278_v31  ;;  %302 = vmatpush1.bf16.msra.mxu1 %v1283_v32  ;;  %v1303_v35 = vld [vmem:[%s1563_s3 + $0x24] ss:$8 sps:$4 sm:$0xff]  }
  0x2b   :  { %v1005_v30 = vsel %vm225_vm2, 1.0, %v1186_v29  ;;  %303 = vmatprep.subr.bf16.mxu1 %v1288_v33  ;;  %v1310_v36 = vld [vmem:[%s1563_s3 + $0x20] ss:$8 sps:$4 sm:$0xff]   ;;  %v1317_v37 = vld [vmem:[%s1563_s3 + $0x34] ss:$8 sps:$4 sm:$0xff]   ;;  %vm297_vm3 = vcmask 523264  }
  0x2c   :  { %1001 = vmatmul.mubr.msk.bf16.vlgmr.msra.gmra.mrb[0].mxu0 %vm123_vm0, %v1059_v3  ;;  %v1257_v9 = vrot.slane %v81_v7, %v85_v6  ;;  %v1259_v10 = vrot.slane %v81_v7, %v89_v8  ;;  %vm64_vm1 = vcmp.lt.s32.totalorder %v60_v18, 192  ;;  %v1324_v38 = vld [vmem:[%s1563_s3 + $0x30] ss:$8 sps:$4 sm:$0xff]   ;;  %v1072_v2 = vld [vmem:[%s1560_s0 + $0x8] sm:$0xff]   ;;  %vm363_vm4 = vcmask 261120  }
  0x2d   :  { %178 = vmatprep.mubr.bf16.mxu0 %v1183_v0  ;;  %v1267_v20 = vsel %vm64_vm1, 1.0, %v1184_v19  ;;  %v1269_v24 = vsel %vm64_vm1, 0.0, %v1184_v19  ;;  %447 = vmatpush1.bf16.msra.mxu0 %v1283_v32 }
  0x2e   :  { %448 = vmatprep.subr.bf16.mxu0 %v1288_v33  ;;  %304 = vmatpush1.bf16.msra.mxu1 %v1296_v34 }
  0x2f   :  { %305 = vmatprep.subr.bf16.mxu1 %v1303_v35 }
  0x31   :  { %449 = vmatpush1.bf16.msra.mxu0 %v1296_v34 }
  0x32   :  { %450 = vmatprep.subr.bf16.mxu0 %v1303_v35  ;;  %306 = vmatpush1.bf16.msra.mxu1 %v1310_v36 }
  0x33   :  { %307 = vmatprep.subr.bf16.mxu1 %v1317_v37 }
  0x34   :  { %1002 = vmatmul.mubr.msk.bf16.gmra.mrb[4].mxu0 %vm123_vm0, %v1072_v2 }
  0x35   :  { %451 = vmatpush1.bf16.msra.mxu0 %v1310_v36  ;;  %188 = vmatprep.mubr.bf16.mxu0 %v1183_v0 }
  0x36   :  { %452 = vmatprep.subr.bf16.mxu0 %v1317_v37  ;;  %308 = vmatpush1.bf16.msra.mxu1 %v1324_v38 }
  0x37   :  { %374 = vmatprep.subr.bf16.mxu1 %v1278_v31 }
  0x39   :  { %453 = vmatpush1.bf16.msra.mxu0 %v1324_v38 }
  0x3a   :  { %590 = vmatprep.subr.bf16.mxu0 %v1278_v31 }
  0xff   :  { %v170_v11 = vpop.f32.mrb[0].mxu0 }
 0x100   :  { %v171_v12 = vadd.f32 %v170_v11, %v1257_v9  ;;  %v172_v13 = vpop.f32.mrb[1].mxu0 }
 0x101   :  { %v173_v15 = vadd.f32 %v172_v13, %v1259_v10  ;;  %v1263_v16 = vpop.f32.mrb[2].mxu0 }
 0x102   :  { %1077 = vtanh.f32 %v171_v12  ;;  %v1265_v17 = vpop.f32.mrb[3].mxu0  ;;  %v175_v48 = vadd.f32 %v1263_v16, %v1257_v9 }
 0x103   :  { %1079 = vtanh.f32 %v173_v15  ;;  %v177_v49 = vadd.f32 %v1265_v17, %v1259_v10 }
 0x107   :  { %v180_v8 = vpop.f32.mrb[4].mxu0 }
 0x108   :  { %v182_v11 = vpop.f32.mrb[5].mxu0  ;;  %v181_v15 = vadd.f32 %v180_v8, %v1257_v9 }
 0x109   :  { %v1361_v12 = vpop.f32.mrb[6].mxu0  ;;  %v183_v16 = vadd.f32 %v182_v11, %v1259_v10 }
 0x10a   :  { %v1363_v13 = vpop.f32.mrb[7].mxu0 }
 0x10c   :  { %v1078_v21 = vpop.eup %1077 }
 0x10d   :  { %v1080_v22 = vpop.eup %1079  ;;  %v232_v23 = vmul.f32 0.5, %v1078_v21 }
 0x10e   :  { %v233_v25 = vmul.f32 %v1080_v22, %v1267_v20 }
 0x10f   :  { %v234_v26 = vadd.f32 0.5, %v232_v23 }
 0x110   :  { %v235_v27 = vadd.f32 %v233_v25, %v1269_v24 }
 0x111   :  { %v236_v39 = vmul.f32 0.0, %v234_v26 }
 0x112   :  { %v237_v28 = vmul.f32 %v235_v27, %v234_v26 }
 0x114   :  { %239 = vrot.lane.b32.xlu0 %v237_v28, %s1185_s2 }
 0x118   :  { %246 = vrot.lane.b32.xlu0 %v1005_v30, %s1185_s2 }
 0x186   :  { %v240_v40 = vpop.permute.xlu0 %239 }
 0x187   :  { %v242_v41 = vadd.f32 %v240_v40, %v236_v39  ;;  %v1073_v40 = vld [vmem:[%s1560_s0 + $0x10] sm:$0xff]  }
 0x188   :  { %1003 = vmatmul.mubr.msk.bf16.gmra.mrb[8].mxu0 %vm123_vm0, %v1073_v40 }
 0x189   :  { %1081 = vtanh.f32 %v242_v41  ;;  %198 = vmatprep.mubr.bf16.mxu0 %v1183_v0 }
 0x18a   :  { %v247_v44 = vpop.permute.xlu0 %246 }
 0x18b   :  { %v250_v60 = vmul.f32 %v247_v44, %v242_v41  ;;  %v1074_v41 = vld [vmem:[%s1560_s0 + $0x18] sm:$0xff]   ;;  %s1187_s0 = smov 32  }
 0x190   :  { %1004 = vmatmul.mubr.msk.bf16.gmra.mrb[12].mxu0 %vm123_vm0, %v1074_v41 }
 0x191   :  { %478 = vmatprep.mubr.bf16.mxu0 %v1183_v0 }
 0x193   :  { %v1082_v42 = vpop.eup %1081 }
 0x194   :  { %v244_v43 = vmul.f32 %v1082_v42, %v235_v27 }
 0x196   :  { %v249_v45 = vmul.f32 %v247_v44, %v244_v43 }
 0x198   :  { %v253_v46 = vpack.c.bf16 %v249_v45, %v249_v45 }
 0x19a   :  { %255 = vrot.lane.b32.xlu1 %v253_v46, %s1185_s2 }
 0x20c   :  { %v256_v47 = vpop.permute.xlu1 %255 }
 0x20d   :  { %1014 = vmatmul.mubr.msk.bf16.vlgmr.msra.gmra.mrb[0].mxu1 %vm297_vm3, %v256_v47 }
 0x20e   :  { %375 = vmatpush1.bf16.msra.mxu1 %v1283_v32  ;;  %406 = vmatprep.mubr.bf16.mxu1 %v1183_v0 }
 0x20f   :  { %376 = vmatprep.subr.bf16.mxu1 %v1288_v33 }
 0x212   :  { %377 = vmatpush1.bf16.msra.mxu1 %v1296_v34 }
 0x213   :  { %378 = vmatprep.subr.bf16.mxu1 %v1303_v35 }
 0x216   :  { %379 = vmatpush1.bf16.msra.mxu1 %v1310_v36 }
 0x217   :  { %380 = vmatprep.subr.bf16.mxu1 %v1317_v37 }
 0x21a   :  { %381 = vmatpush1.bf16.msra.mxu1 %v1324_v38 }
 0x21b   :  { %518 = vmatprep.subr.bf16.mxu1 %v1278_v31 }
 0x2e0   :  { %v335_v50 = vpop.f32.mrb[0].mxu1 }
 0x2e1   :  { %v342_v51 = vadd.f32 %v335_v50, %v175_v48  ;;  %v337_v52 = vpop.f32.mrb[1].mxu1  ;;  %v190_v48 = vpop.f32.mrb[8].mxu0 }
 0x2e2   :  { %v343_v53 = vadd.f32 %v337_v52, %v177_v49  ;;  %v339_v54 = vpop.f32.mrb[2].mxu1  ;;  %v192_v49 = vpop.f32.mrb[9].mxu0 }
 0x2e3   :  { %1083 = vtanh.f32 %v342_v51  ;;  %v340_v55 = vpop.f32.mrb[3].mxu1  ;;  %v1395_v50 = vpop.f32.mrb[10].mxu0 }
 0x2e4   :  { %1085 = vtanh.f32 %v343_v53  ;;  %v1397_v51 = vpop.f32.mrb[11].mxu0 }
 0x2e5   :  { %v1399_v52 = vpop.f32.mrb[12].mxu0 }
 0x2e6   :  { %v1401_v53 = vpop.f32.mrb[13].mxu0 }
 0x2e7   :  { %v1403_v54 = vpop.f32.mrb[14].mxu0 }
 0x2e8   :  { %v1405_v55 = vpop.f32.mrb[15].mxu0 }
 0x2ed   :  { %v1084_v56 = vpop.eup %1083 }
 0x2ee   :  { %v1086_v57 = vpop.eup %1085  ;;  %v346_v58 = vmul.f32 0.5, %v1084_v56 }
 0x2ef   :  { %v347_v59 = vmul.f32 %v1086_v57, %v1267_v20  ;;  %v185_v57 = vadd.f32 %v1361_v12, %v1257_v9 }
 0x2f0   :  { %v348_v61 = vadd.f32 0.5, %v346_v58  ;;  %v187_v58 = vadd.f32 %v1363_v13, %v1259_v10 }
 0x2f1   :  { %v349_v62 = vadd.f32 %v347_v59, %v1269_v24 }
 0x2f2   :  { %v350_v63 = vmul.f32 %v348_v61, %v250_v60 }
 0x2f3   :  { %v351_v1 = vmul.f32 %v349_v62, %v348_v61 }
 0x2f5   :  { %353 = vrot.lane.b32.xlu1 %v351_v1, %s1185_s2 }
 0x367   :  { %v354_v3 = vpop.permute.xlu1 %353 }
 0x368   :  { %v356_v4 = vadd.f32 %v354_v3, %v350_v63 }
 0x36a   :  { %1087 = vtanh.f32 %v356_v4 }
 0x374   :  { %v1088_v5 = vpop.eup %1087 }
 0x375   :  { %v1356_v6 = vmul.f32 %v1088_v5, %v349_v62 }
 0x377   :  { %v367_v7 = vpack.c.bf16 %v1356_v6, %v1356_v6 }
 0x379   :  { %369 = vrot.lane.b32.xlu0 %v367_v7, %s1185_s2 }
 0x3eb   :  { %v370_v14 = vpop.permute.xlu0 %369 }
 0x3ec   :  { %1015 = vmatmul.mubr.msk.bf16.vlgmr.msra.gmra.mrb[4].mxu1 %vm297_vm3, %v370_v14 }
 0x3ed   :  { %519 = vmatpush1.bf16.msra.mxu1 %v1283_v32  ;;  %550 = vmatprep.mubr.bf16.mxu1 %v1183_v0 }
 0x3ee   :  { %520 = vmatprep.subr.bf16.mxu1 %v1288_v33 }
 0x3f1   :  { %521 = vmatpush1.bf16.msra.mxu1 %v1296_v34 }
 0x3f2   :  { %522 = vmatprep.subr.bf16.mxu1 %v1303_v35 }
 0x3f5   :  { %523 = vmatpush1.bf16.msra.mxu1 %v1310_v36 }
 0x3f6   :  { %524 = vmatprep.subr.bf16.mxu1 %v1317_v37 }
 0x3f9   :  { %525 = vmatpush1.bf16.msra.mxu1 %v1324_v38 }
 0x3fa   :  { %662 = vmatprep.subr.bf16.mxu1 %v1278_v31 }
 0x4bf   :  { %v408_v17 = vpop.f32.mrb[4].mxu1 }
 0x4c0   :  { %v415_v18 = vadd.f32 %v408_v17, %v181_v15  ;;  %v410_v19 = vpop.f32.mrb[5].mxu1 }
 0x4c1   :  { %v416_v21 = vadd.f32 %v410_v19, %v183_v16  ;;  %v412_v22 = vpop.f32.mrb[6].mxu1  ;;  %v191_v19 = vadd.f32 %v190_v48, %v1257_v9 }
 0x4c2   :  { %1089 = vtanh.f32 %v415_v18  ;;  %v413_v23 = vpop.f32.mrb[7].mxu1 }
 0x4c3   :  { %1091 = vtanh.f32 %v416_v21  ;;  %v193_v21 = vadd.f32 %v192_v49, %v1259_v10 }
 0x4cc   :  { %v1090_v25 = vpop.eup %1089 }
 0x4cd   :  { %v1092_v26 = vpop.eup %1091  ;;  %v419_v27 = vmul.f32 0.5, %v1090_v25 }
 0x4ce   :  { %v420_v28 = vmul.f32 %v1092_v26, %v1267_v20 }
 0x4cf   :  { %v421_v29 = vadd.f32 0.5, %v419_v27 }
 0x4d0   :  { %v422_v30 = vadd.f32 %v420_v28, %v1269_v24 }
 0x4d1   :  { %v423_v42 = vmul.f32 %v421_v29, %v356_v4 }
 0x4d2   :  { %v424_v39 = vmul.f32 %v422_v30, %v421_v29 }
 0x4d4   :  { %426 = vrot.lane.b32.xlu1 %v424_v39, %s1185_s2 }
 0x546   :  { %v427_v43 = vpop.permute.xlu1 %426 }
 0x547   :  { %v429_v44 = vadd.f32 %v427_v43, %v423_v42 }
 0x549   :  { %1093 = vtanh.f32 %v429_v44 }
 0x553   :  { %v1094_v45 = vpop.eup %1093 }
 0x554   :  { %v1390_v46 = vmul.f32 %v1094_v45, %v422_v30 }
 0x556   :  { %v439_v47 = vpack.c.bf16 %v1390_v46, %v1390_v46 }
 0x558   :  { %441 = vrot.lane.b32.xlu0 %v439_v47, %s1185_s2 }
 0x5ca   :  { %v442_v56 = vpop.permute.xlu0 %441 }
 0x5cb   :  { %1016 = vmatmul.mubr.msk.bf16.vlgmr.msra.gmra.mrb[16].mxu0 %vm297_vm3, %v442_v56 }
 0x5cc   :  { %591 = vmatpush1.bf16.msra.mxu0 %v1283_v32  ;;  %622 = vmatprep.mubr.bf16.mxu0 %v1183_v0 }
 0x5cd   :  { %592 = vmatprep.subr.bf16.mxu0 %v1288_v33 }
 0x5d0   :  { %593 = vmatpush1.bf16.msra.mxu0 %v1296_v34 }
 0x5d1   :  { %594 = vmatprep.subr.bf16.mxu0 %v1303_v35 }
 0x5d4   :  { %595 = vmatpush1.bf16.msra.mxu0 %v1310_v36 }
 0x5d5   :  { %596 = vmatprep.subr.bf16.mxu0 %v1317_v37 }
 0x5d8   :  { %597 = vmatpush1.bf16.msra.mxu0 %v1324_v38 }
 0x5d9   :  { %734 = vmatprep.subr.bf16.mxu0 %v1278_v31 }
 0x69e   :  { %v480_v59 = vpop.f32.mrb[16].mxu0 }
 0x69f   :  { %v487_v60 = vadd.f32 %v480_v59, %v185_v57  ;;  %v482_v61 = vpop.f32.mrb[17].mxu0  ;;  %v195_v57 = vadd.f32 %v1395_v50, %v1257_v9 }
 0x6a0   :  { %v488_v62 = vadd.f32 %v482_v61, %v187_v58  ;;  %v484_v63 = vpop.f32.mrb[18].mxu0  ;;  %v197_v58 = vadd.f32 %v1397_v51, %v1259_v10 }
 0x6a1   :  { %1095 = vtanh.f32 %v487_v60  ;;  %v485_v1 = vpop.f32.mrb[19].mxu0 }
 0x6a2   :  { %1097 = vtanh.f32 %v488_v62 }
 0x6ab   :  { %v1096_v2 = vpop.eup %1095 }
 0x6ac   :  { %v1098_v3 = vpop.eup %1097  ;;  %v491_v4 = vmul.f32 0.5, %v1096_v2 }
 0x6ad   :  { %v492_v5 = vmul.f32 %v1098_v3, %v1267_v20 }
 0x6ae   :  { %v493_v7 = vadd.f32 0.5, %v491_v4 }
 0x6af   :  { %v494_v8 = vadd.f32 %v492_v5, %v1269_v24 }
 0x6b0   :  { %v495_v12 = vmul.f32 %v493_v7, %v429_v44 }
 0x6b1   :  { %v496_v11 = vmul.f32 %v494_v8, %v493_v7 }
 0x6b3   :  { %498 = vrot.lane.b32.xlu1 %v496_v11, %s1185_s2 }
 0x725   :  { %v499_v13 = vpop.permute.xlu1 %498 }
 0x726   :  { %v501_v14 = vadd.f32 %v499_v13, %v495_v12 }
 0x728   :  { %1099 = vtanh.f32 %v501_v14 }
 0x732   :  { %v1100_v15 = vpop.eup %1099 }
 0x733   :  { %v1424_v16 = vmul.f32 %v1100_v15, %v494_v8 }
 0x735   :  { %v511_v17 = vpack.c.bf16 %v1424_v16, %v1424_v16 }
 0x737   :  { %513 = vrot.lane.b32.xlu0 %v511_v17, %s1185_s2 }
 0x7a9   :  { %v514_v18 = vpop.permute.xlu0 %513 }
 0x7aa   :  { %1017 = vmatmul.mubr.msk.bf16.vlgmr.msra.gmra.mrb[8].mxu1 %vm297_vm3, %v514_v18  ;;  %v201_v18 = vadd.f32 %v1399_v52, %v1257_v9 }
 0x7ab   :  { %663 = vmatpush1.bf16.msra.mxu1 %v1283_v32  ;;  %694 = vmatprep.mubr.bf16.mxu1 %v1183_v0 }
 0x7ac   :  { %664 = vmatprep.subr.bf16.mxu1 %v1288_v33 }
 0x7af   :  { %665 = vmatpush1.bf16.msra.mxu1 %v1296_v34 }
 0x7b0   :  { %666 = vmatprep.subr.bf16.mxu1 %v1303_v35 }
 0x7b3   :  { %667 = vmatpush1.bf16.msra.mxu1 %v1310_v36 }
 0x7b4   :  { %668 = vmatprep.subr.bf16.mxu1 %v1317_v37 }
 0x7b7   :  { %669 = vmatpush1.bf16.msra.mxu1 %v1324_v38 }
 0x7b8   :  { %806 = vmatprep.subr.bf16.mxu1 %v1278_v31 }
 0x87d   :  { %v552_v22 = vpop.f32.mrb[8].mxu1 }
 0x87e   :  { %v559_v23 = vadd.f32 %v552_v22, %v191_v19  ;;  %v554_v25 = vpop.f32.mrb[9].mxu1 }
 0x87f   :  { %v560_v26 = vadd.f32 %v554_v25, %v193_v21  ;;  %v556_v27 = vpop.f32.mrb[10].mxu1 }
 0x880   :  { %1101 = vtanh.f32 %v559_v23  ;;  %v557_v28 = vpop.f32.mrb[11].mxu1 }
 0x881   :  { %1103 = vtanh.f32 %v560_v26 }
 0x88a   :  { %v1102_v29 = vpop.eup %1101 }
 0x88b   :  { %v1104_v30 = vpop.eup %1103  ;;  %v563_v39 = vmul.f32 0.5, %v1102_v29 }
 0x88c   :  { %v564_v40 = vmul.f32 %v1104_v30, %v1267_v20 }
 0x88d   :  { %v565_v41 = vadd.f32 0.5, %v563_v39 }
 0x88e   :  { %v566_v31 = vadd.f32 %v564_v40, %v1269_v24  ;;  %v205_v40 = vadd.f32 %v1403_v54, %v1257_v9 }
 0x88f   :  { %v567_v43 = vmul.f32 %v565_v41, %v501_v14 }
 0x890   :  { %v568_v42 = vmul.f32 %v566_v31, %v565_v41  ;;  %v207_v41 = vadd.f32 %v1405_v55, %v1259_v10 }
 0x892   :  { %570 = vrot.lane.b32.xlu1 %v568_v42, %s1185_s2 }
 0x904   :  { %v571_v44 = vpop.permute.xlu1 %570 }
 0x905   :  { %v573_v45 = vadd.f32 %v571_v44, %v567_v43 }
 0x907   :  { %1105 = vtanh.f32 %v573_v45 }
 0x911   :  { %v1106_v47 = vpop.eup %1105 }
 0x912   :  { %v1444_v48 = vmul.f32 %v1106_v47, %v566_v31 }
 0x914   :  { %v583_v49 = vpack.c.bf16 %v1444_v48, %v1444_v48 }
 0x916   :  { %585 = vrot.lane.b32.xlu0 %v583_v49, %s1185_s2 }
 0x988   :  { %v586_v56 = vpop.permute.xlu0 %585 }
 0x989   :  { %1018 = vmatmul.mubr.msk.bf16.vlgmr.msra.gmra.mrb[20].mxu0 %vm297_vm3, %v586_v56 }
 0x98a   :  { %735 = vmatpush1.bf16.msra.mxu0 %v1283_v32  ;;  %766 = vmatprep.mubr.bf16.mxu0 %v1183_v0 }
 0x98b   :  { %736 = vmatprep.subr.bf16.mxu0 %v1288_v33 }
 0x98e   :  { %737 = vmatpush1.bf16.msra.mxu0 %v1296_v34 }
 0x98f   :  { %738 = vmatprep.subr.bf16.mxu0 %v1303_v35 }
 0x992   :  { %739 = vmatpush1.bf16.msra.mxu0 %v1310_v36 }
 0x993   :  { %740 = vmatprep.subr.bf16.mxu0 %v1317_v37 }
 0x996   :  { %741 = vmatpush1.bf16.msra.mxu0 %v1324_v38 }
 0xa5c   :  { %v624_v59 = vpop.f32.mrb[20].mxu0 }
 0xa5d   :  { %v631_v60 = vadd.f32 %v624_v59, %v195_v57  ;;  %v626_v61 = vpop.f32.mrb[21].mxu0 }
 0xa5e   :  { %v632_v62 = vadd.f32 %v626_v61, %v197_v58  ;;  %v628_v63 = vpop.f32.mrb[22].mxu0 }
 0xa5f   :  { %1107 = vtanh.f32 %v631_v60  ;;  %v629_v1 = vpop.f32.mrb[23].mxu0 }
 0xa60   :  { %1109 = vtanh.f32 %v632_v62 }
 0xa69   :  { %v1108_v2 = vpop.eup %1107 }
 0xa6a   :  { %v1110_v3 = vpop.eup %1109  ;;  %v635_v4 = vmul.f32 0.5, %v1108_v2 }
 0xa6b   :  { %v636_v5 = vmul.f32 %v1110_v3, %v1267_v20 }
 0xa6c   :  { %v637_v7 = vadd.f32 0.5, %v635_v4 }
 0xa6d   :  { %v638_v8 = vadd.f32 %v636_v5, %v1269_v24 }
 0xa6e   :  { %v639_v51 = vmul.f32 %v637_v7, %v573_v45 }
 0xa6f   :  { %v640_v50 = vmul.f32 %v638_v8, %v637_v7 }
 0xa71   :  { %642 = vrot.lane.b32.xlu1 %v640_v50, %s1185_s2 }
 0xae3   :  { %v643_v11 = vpop.permute.xlu1 %642 }
 0xae4   :  { %v645_v12 = vadd.f32 %v643_v11, %v639_v51 }
 0xae6   :  { %1111 = vtanh.f32 %v645_v12 }
 0xaf0   :  { %v1112_v13 = vpop.eup %1111 }
 0xaf1   :  { %v1465_v14 = vmul.f32 %v1112_v13, %v638_v8 }
 0xaf3   :  { %v655_v15 = vpack.c.bf16 %v1465_v14, %v1465_v14 }
 0xaf5   :  { %657 = vrot.lane.b32.xlu0 %v655_v15, %s1185_s2 }
 0xb67   :  { %v658_v17 = vpop.permute.xlu0 %657 }
 0xb68   :  { %1019 = vmatmul.mubr.msk.bf16.vlgmr.msra.gmra.mrb[12].mxu1 %vm297_vm3, %v658_v17  ;;  %v1075_v17 = vld [vmem:[%s1564_s4] sm:$0xff]  }
 0xb69   :  { %807 = vmatpush1.bf16.msra.mxu1 %v1283_v32  ;;  %838 = vmatprep.mubr.bf16.mxu1 %v1183_v0  ;;  %v203_v32 = vadd.f32 %v1401_v53, %v1259_v10 }
 0xb6a   :  { %808 = vmatprep.subr.bf16.mxu1 %v1288_v33  ;;  %1035 = vmatprep.subr.bf16.mxu0 %v1075_v17 }
 0xb6d   :  { %809 = vmatpush1.bf16.msra.mxu1 %v1296_v34 }
 0xb6e   :  { %810 = vmatprep.subr.bf16.mxu1 %v1303_v35 }
 0xb71   :  { %811 = vmatpush1.bf16.msra.mxu1 %v1310_v36 }
 0xb72   :  { %812 = vmatprep.subr.bf16.mxu1 %v1317_v37 }
 0xb75   :  { %813 = vmatpush1.bf16.msra.mxu1 %v1324_v38 }
 0xc3b   :  { %v696_v19 = vpop.f32.mrb[12].mxu1 }
 0xc3c   :  { %v703_v0 = vadd.f32 %v696_v19, %v201_v18  ;;  %v698_v21 = vpop.f32.mrb[13].mxu1  ;;  %v1076_v19 = vld [vmem:[%s1564_s4 + $0x8] sm:$0xff]  }
 0xc3d   :  { %v704_v33 = vadd.f32 %v698_v21, %v203_v32  ;;  %v700_v22 = vpop.f32.mrb[14].mxu1 }
 0xc3e   :  { %1113 = vtanh.f32 %v703_v0  ;;  %v701_v34 = vpop.f32.mrb[15].mxu1 }
 0xc3f   :  { %1115 = vtanh.f32 %v704_v33 }
 0xc48   :  { %v1114_v35 = vpop.eup %1113 }
 0xc49   :  { %v1116_v36 = vpop.eup %1115  ;;  %v707_v23 = vmul.f32 0.5, %v1114_v35 }
 0xc4a   :  { %v708_v37 = vmul.f32 %v1116_v36, %v1267_v20 }
 0xc4b   :  { %v709_v38 = vadd.f32 0.5, %v707_v23 }
 0xc4c   :  { %v710_v25 = vadd.f32 %v708_v37, %v1269_v24 }
 0xc4d   :  { %v711_v53 = vmul.f32 %v709_v38, %v645_v12 }
 0xc4e   :  { %v712_v52 = vmul.f32 %v710_v25, %v709_v38 }
 0xc50   :  { %714 = vrot.lane.b32.xlu1 %v712_v52, %s1185_s2 }
 0xcc2   :  { %v715_v26 = vpop.permute.xlu1 %714 }
 0xcc3   :  { %v717_v27 = vadd.f32 %v715_v26, %v711_v53 }
 0xcc5   :  { %1117 = vtanh.f32 %v717_v27 }
 0xccf   :  { %v1118_v28 = vpop.eup %1117 }
 0xcd0   :  { %v1486_v29 = vmul.f32 %v1118_v28, %v710_v25 }
 0xcd2   :  { %v727_v30 = vpack.c.bf16 %v1486_v29, %v1486_v29 }
 0xcd4   :  { %729 = vrot.lane.b32.xlu0 %v727_v30, %s1185_s2  ;;  %v1022_v30 = vld [vmem:[#allocation6] ss:$0 sm:$0xff] }
 0xd46   :  { %v730_v39 = vpop.permute.xlu0 %729 }
 0xd47   :  { %1020 = vmatmul.mubr.msk.bf16.vlgmr.msra.gmra.mrb[24].mxu0 %vm297_vm3, %v730_v39 }
 0xd48   :  { %1036 = vmatpush3.bf16.msra.mxu0 %v1075_v17 }
 0xd49   :  { %1037 = vmatprep.subr.bf16.mxu0 %v1076_v19 }
 0xd4c   :  { %1038 = vmatpush3.bf16.msra.mxu0 %v1076_v19 }
 0xe1a   :  { %v768_v31 = vpop.f32.mrb[24].mxu0 }
 0xe1b   :  { %v775_v42 = vadd.f32 %v768_v31, %v205_v40  ;;  %v770_v43 = vpop.f32.mrb[25].mxu0 }
 0xe1c   :  { %v776_v44 = vadd.f32 %v770_v43, %v207_v41  ;;  %v772_v45 = vpop.f32.mrb[26].mxu0 }
 0xe1d   :  { %1119 = vtanh.f32 %v775_v42  ;;  %v773_v47 = vpop.f32.mrb[27].mxu0 }
 0xe1e   :  { %1121 = vtanh.f32 %v776_v44 }
 0xe27   :  { %v1120_v49 = vpop.eup %1119 }
 0xe28   :  { %v1122_v56 = vpop.eup %1121  ;;  %v779_v57 = vmul.f32 0.5, %v1120_v49 }
 0xe29   :  { %v780_v58 = vmul.f32 %v1122_v56, %v1267_v20 }
 0xe2a   :  { %v781_v59 = vadd.f32 0.5, %v779_v57 }
 0xe2b   :  { %v782_v60 = vadd.f32 %v780_v58, %v1269_v24 }
 0xe2c   :  { %v783_v10 = vmul.f32 %v781_v59, %v717_v27 }
 0xe2d   :  { %v784_v9 = vmul.f32 %v782_v60, %v781_v59 }
 0xe2f   :  { %786 = vrot.lane.b32.xlu1 %v784_v9, %s1185_s2 }
 0xea1   :  { %v787_v54 = vpop.permute.xlu1 %786 }
 0xea2   :  { %v789_v55 = vadd.f32 %v787_v54, %v783_v10 }
 0xea4   :  { %1123 = vtanh.f32 %v789_v55 }
 0xeae   :  { %v1124_v61 = vpop.eup %1123 }
 0xeaf   :  { %v791_v62 = vmul.f32 %v1124_v61, %v782_v60 }
 0xeb1   :  { %v799_v63 = vpack.c.bf16 %v791_v62, %v791_v62 }
 0xeb3   :  { %801 = vrot.lane.b32.xlu0 %v799_v63, %s1185_s2 }
 0xeb7   :  { %360 = vrot.lane.b32.xlu0 %v1356_v6, %s1187_s0 }
 0xebb   :  { %505 = vrot.lane.b32.xlu0 %v1424_v16, %s1187_s0 }
 0xebf   :  { %649 = vrot.lane.b32.xlu0 %v1465_v14, %s1187_s0 }
 0xec3   :  { %793 = vrot.lane.b32.xlu0 %v791_v62, %s1187_s0 }
 0xf25   :  { %v802_v1 = vpop.permute.xlu0 %801 }
 0xf26   :  { %1021 = vmatmul.mubr.msk.bf16.vlgmr.msra.gmra.mrb[16].mxu1 %vm297_vm3, %v802_v1 }
 0xf29   :  { %v361_v2 = vpop.permute.xlu0 %360 }
 0xf2a   :  { %364 = vst.msk [vmem:[#allocation3] sm:$0xff] %vm363_vm4, %v361_v2 }
 0xf2d   :  { %v506_v3 = vpop.permute.xlu0 %505 }
 0xf2e   :  { %508 = vst.msk [vmem:[#allocation3 + $0x10] sm:$0xff] %vm363_vm4, %v506_v3 }
 0xf31   :  { %v650_v4 = vpop.permute.xlu0 %649  ;;  %v869_v34 = vld [vmem:[#allocation3] sm:$0xff] }
 0xf32   :  { %652 = vst.msk [vmem:[#allocation3 + $0x20] sm:$0xff] %vm363_vm4, %v650_v4 }
 0xf35   :  { %v794_v6 = vpop.permute.xlu0 %793  ;;  %v871_v23 = vld [vmem:[#allocation3 + $0x10] sm:$0xff] }
 0xf36   :  { %796 = vst.msk [vmem:[#allocation3 + $0x30] sm:$0xff] %vm363_vm4, %v794_v6 }
 0xf39   :  { %v873_v25 = vld [vmem:[#allocation3 + $0x20] sm:$0xff] }
 0xf3d   :  { %v875_v27 = vld [vmem:[#allocation3 + $0x30] sm:$0xff] }
 0xff9   :  { %v840_v16 = vpop.f32.mrb[16].mxu1 }
 0xffa   :  { %v847_v5 = vadd.f32 %v840_v16, %v205_v40  ;;  %v842_v7 = vpop.f32.mrb[17].mxu1 }
 0xffb   :  { %v848_v8 = vadd.f32 %v842_v7, %v207_v41  ;;  %v844_v50 = vpop.f32.mrb[18].mxu1 }
 0xffc   :  { %1125 = vtanh.f32 %v847_v5  ;;  %v845_v51 = vpop.f32.mrb[19].mxu1 }
 0xffd   :  { %1127 = vtanh.f32 %v848_v8 }
0x1006   :  { %v1126_v11 = vpop.eup %1125 }
0x1007   :  { %v1128_v12 = vpop.eup %1127  ;;  %v851_v13 = vmul.f32 0.5, %v1126_v11 }
0x1008   :  { %v852_v14 = vmul.f32 %v1128_v12, %v1267_v20 }
0x1009   :  { %v853_v15 = vadd.f32 0.5, %v851_v13 }
0x100a   :  { %v854_v18 = vadd.f32 %v852_v14, %v1269_v24 }
0x100b   :  { %v855_v20 = vmul.f32 %v853_v15, %v789_v55 }
0x100c   :  { %v856_v32 = vmul.f32 %v854_v18, %v853_v15 }
0x100e   :  { %858 = vrot.lane.b32.xlu1 %v856_v32, %s1185_s2 }
0x1012   :  { %433 = vrot.lane.b32.xlu1 %v1390_v46, %s1187_s0 }
0x1016   :  { %577 = vrot.lane.b32.xlu1 %v1444_v48, %s1187_s0 }
0x101a   :  { %721 = vrot.lane.b32.xlu1 %v1486_v29, %s1187_s0 }
0x1080   :  { %v859_v24 = vpop.permute.xlu1 %858 }
0x1081   :  { %v861_v0 = vadd.f32 %v859_v24, %v855_v20 }
0x1083   :  { %1129 = vtanh.f32 %v861_v0 }
0x1084   :  { %v434_v21 = vpop.permute.xlu1 %433 }
0x1085   :  { %436 = vst.msk [vmem:[#allocation3 + $0x8] sm:$0xff] %vm363_vm4, %v434_v21 }
0x1088   :  { %v578_v33 = vpop.permute.xlu1 %577 }
0x1089   :  { %580 = vst.msk [vmem:[#allocation3 + $0x18] sm:$0xff] %vm363_vm4, %v578_v33 }
0x108c   :  { %v722_v22 = vpop.permute.xlu1 %721  ;;  %v870_v35 = vld [vmem:[#allocation3 + $0x8] sm:$0xff] }
0x108d   :  { %v1130_v46 = vpop.eup %1129  ;;  %724 = vst.msk [vmem:[#allocation3 + $0x28] sm:$0xff] %vm363_vm4, %v722_v22  ;;  %v877_v48 = vpack.c.bf16 %v870_v35, %v869_v34 }
0x108e   :  { %v863_v36 = vmul.f32 %v1130_v46, %v854_v18 }
0x108f   :  { %1039 = vmatprep.mubr.msk.bf16.mxu0 %vm363_vm4, %v877_v48 }
0x1090   :  { %865 = vrot.lane.b32.xlu1 %v863_v36, %s1187_s0  ;;  %v872_v37 = vld [vmem:[#allocation3 + $0x18] sm:$0xff] }
0x1091   :  { %v878_v38 = vpack.c.bf16 %v872_v37, %v871_v23 }
0x1093   :  { %1040 = vmatmul.mubr.msk.bf16.vlgmr.msra.gmra.mrb[28].mxu0 %vm363_vm4, %v878_v38 }
0x1094   :  { %v874_v52 = vld [vmem:[#allocation3 + $0x28] sm:$0xff] }
0x1095   :  { %v879_v53 = vpack.c.bf16 %v874_v52, %v873_v25 }
0x1097   :  { %1043 = vmatprep.mubr.msk.bf16.mxu0 %vm363_vm4, %v879_v53 }
0x1102   :  { %v866_v26 = vpop.permute.xlu1 %865 }
0x1103   :  { %868 = vst.msk [vmem:[#allocation3 + $0x38] sm:$0xff] %vm363_vm4, %v866_v26 }
0x110a   :  { %v876_v28 = vld [vmem:[#allocation3 + $0x38] sm:$0xff] }
0x110b   :  { %v880_v29 = vpack.c.bf16 %v876_v28, %v875_v27 }
0x110d   :  { %1044 = vmatmul.mubr.msk.bf16.gmra.mrb[32].mxu0 %vm363_vm4, %v880_v29 }
0x1166   :  { %v1041_v39 = vpop.f32.mrb[28].mxu0 }
0x1167   :  { %v959_v40 = vadd.f32 %v1041_v39, %v1022_v30  ;;  %v950_v41 = vpop.f32.mrb[29].mxu0 }
0x1168   :  { %v951_v31 = vadd.f32 %v1022_v30, %v950_v41  ;;  %v1042_v42 = vpop.f32.mrb[30].mxu0 }
0x1169   :  { %983 = vst [vmem:[%s1566_s6 + $0x10] sm:$0xff] %v959_v40  ;;  %v962_v43 = vadd.f32 %v1042_v42, %v1022_v30  ;;  %v953_v44 = vpop.f32.mrb[31].mxu0 }
0x116a   :  { %981 = vst [vmem:[%s1566_s6] sm:$0xff] %v951_v31  ;;  %v954_v45 = vadd.f32 %v1022_v30, %v953_v44 }
0x116b   :  { %984 = vst [vmem:[%s1566_s6 + $0x18] sm:$0xff] %v962_v43 }
0x116c   :  { %982 = vst [vmem:[%s1566_s6 + $0x8] sm:$0xff] %v954_v45 }
0x11e0   :  { %v1045_v47 = vpop.f32.mrb[32].mxu0 }
0x11e1   :  { %v975_v49 = vadd.f32 %v1045_v47, %v1022_v30  ;;  %v966_v56 = vpop.f32.mrb[33].mxu0 }
0x11e2   :  { %v967_v57 = vadd.f32 %v1022_v30, %v966_v56  ;;  %v1046_v58 = vpop.f32.mrb[34].mxu0 }
0x11e3   :  { %987 = vst [vmem:[%s1566_s6 + $0x30] sm:$0xff] %v975_v49  ;;  %v978_v59 = vadd.f32 %v1046_v58, %v1022_v30  ;;  %v969_v60 = vpop.f32.mrb[35].mxu0 }
0x11e4   :  { %985 = vst [vmem:[%s1566_s6 + $0x20] sm:$0xff] %v967_v57  ;;  %v970_v9 = vadd.f32 %v1022_v30, %v969_v60 }
0x11e5   :  { %988 = vst [vmem:[%s1566_s6 + $0x38] sm:$0xff] %v978_v59 }
0x11e6   :  { %986 = vst [vmem:[%s1566_s6 + $0x28] sm:$0xff] %v970_v9 }
0x11e7   :  { %993 = vsyncpa [#allocation5], 1 }
0x11e8   :  { %994 = vsyncpa [#allocation7], 1 }

</bundles_post_ra>
